<compile_context>
chip_gen: v5e
topology: v5e:2x2
jax: 0.10.0
libtpu: 0.0.40
codegen_flags: <defaults>
</compile_context>

<pallas_src>
import jax
import jax.numpy as jnp
from jax import lax
from jax.experimental import pallas as pl
from jax.experimental.pallas import tpu as pltpu

HIDDEN = 10          # fixed by the module: nn.Linear(in_features, 10)
HIDDEN_PAD = 128     # pad hidden dim to one full lane group
LN_EPS = 1e-5        # PyTorch LayerNorm default eps
TILE_B = 512         # batch rows per grid step (f32 x-tile = 64 KiB -> far under VMEM)


def toy_model_kernel(x_ref, w1_ref, w2f_ref, bias_ref, o_ref):
    """One batch tile: fc1 -> ReLU -> LayerNorm (affine folded into fc2) -> fc2."""
    x = x_ref[...]                                                   # (TB, D_in), I/O dtype

    # fc1 (no bias) + ReLU, f32 accumulation.  Padded hidden lanes are exactly 0
    # (zero W1 columns, then ReLU keeps them 0).
    h = jnp.dot(x, w1_ref[...], preferred_element_type=jnp.float32)  # (TB, H_pad) f32
    h = jnp.maximum(h, 0.0)

    # LayerNorm statistics over the HIDDEN valid lanes, single pass.
    # Pad lanes contribute 0 to both sums, so no mask is needed.
    s = jnp.sum(h, axis=-1, keepdims=True)
    s2 = jnp.sum(h * h, axis=-1, keepdims=True)
    mean = s * (1.0 / HIDDEN)
    var = s2 * (1.0 / HIDDEN) - mean * mean                          # biased var (PyTorch)
    inv_std = lax.rsqrt(var + LN_EPS)
    scaled = (h - mean) * inv_std          # pad lanes = -mean*inv_std, zeroed by W2' rows

    # fc2 with gamma folded into W2'; beta enters as a precomputed constant bias row.
    out = jnp.dot(scaled.astype(w2f_ref.dtype), w2f_ref[...],
                  preferred_element_type=jnp.float32)                # (TB, D_out) f32
    o_ref[...] = (out + bias_ref[...]).astype(o_ref.dtype)


def toy_model_forward(x, w1_t_pad, w2_fused, out_bias):
    B, d_in = x.shape
    d_out = w2_fused.shape[1]
    tile_b = B if B <= TILE_B else TILE_B      # single block for small B, else 512-row tiles
    grid = (pl.cdiv(B, tile_b),)
    return pl.pallas_call(
        toy_model_kernel,
        out_shape=jax.ShapeDtypeStruct((B, d_out), x.dtype),
        grid_spec=pltpu.PrefetchScalarGridSpec(
            num_scalar_prefetch=0,
            grid=grid,
            in_specs=[
                pl.BlockSpec((tile_b, d_in), lambda i: (i, 0)),       # streamed per tile
                pl.BlockSpec((d_in, HIDDEN_PAD), lambda i: (0, 0)),   # resident weights
                pl.BlockSpec((HIDDEN_PAD, d_out), lambda i: (0, 0)),  # resident weights
                pl.BlockSpec((1, d_out), lambda i: (0, 0)),           # resident bias row
            ],
            out_specs=pl.BlockSpec((tile_b, d_out), lambda i: (i, 0)),
        ),
        compiler_params=pltpu.CompilerParams(
            dimension_semantics=("parallel",),          # shard batch tiles across TCs (v7x)
            vmem_limit_bytes=32 * 1024 * 1024,          # safe on v5e/v6e/v7x; usage is tiny
        ),
    )(x, w1_t_pad, w2_fused, out_bias)


def make_params(key, in_features, out_features):
    """Reference (PyTorch-shaped) parameters."""
    k1, k2 = jax.random.split(key)
    w1 = jax.random.normal(k1, (HIDDEN, in_features), jnp.float32) * 0.1   # fc1.weight
    w2 = jax.random.normal(k2, (out_features, HIDDEN), jnp.float32) * 0.1  # fc2.weight
    gamma = jnp.ones((HIDDEN,), jnp.float32)                               # ln.weight
    beta = jnp.zeros((HIDDEN,), jnp.float32)                               # ln.bias
    return w1, w2, gamma, beta


def pack_params(w1, w2, gamma, beta, dtype=jnp.float32):
    """Pad hidden to 128 lanes, fold the LayerNorm affine into fc2, cast MXU operands."""
    in_features = w1.shape[1]
    out_features = w2.shape[0]
    w1_t_pad = jnp.zeros((in_features, HIDDEN_PAD), jnp.float32).at[:, :HIDDEN].set(w1.T)
    # out = (diff*inv_std*gamma + beta) @ W2.T = (diff*inv_std) @ (gamma[:,None]*W2.T) + beta@W2.T
    w2_fused = jnp.zeros((HIDDEN_PAD, out_features), jnp.float32).at[:HIDDEN, :].set(
        gamma[:, None] * w2.T)
    out_bias = (beta @ w2.T).reshape(1, out_features)                      # stays f32
    return w1_t_pad.astype(dtype), w2_fused.astype(dtype), out_bias


def reference_forward(x, w1, w2, gamma, beta):
    h = jnp.maximum(x @ w1.T, 0.0)
    mean = jnp.mean(h, axis=-1, keepdims=True)
    var = jnp.mean((h - mean) ** 2, axis=-1, keepdims=True)
    h = (h - mean) / jnp.sqrt(var + LN_EPS) * gamma + beta
    return h @ w2.T


if __name__ == "__main__":
    in_features, out_features = 32, 16

    key = jax.random.PRNGKey(0)
    kx, kp, kx2 = jax.random.split(key, 3)
    w1, w2, gamma, beta = make_params(kp, in_features, out_features)

    # --- small shape, single grid step, f32 (tight numerical check) ---
    batch = 8
    x = jax.random.normal(kx, (batch, in_features), jnp.float32)
    padded_f32 = pack_params(w1, w2, gamma, beta, jnp.float32)
    out = jax.block_until_ready(toy_model_forward(x, *padded_f32))
    ref = reference_forward(x, w1, w2, gamma, beta)
    assert out.shape == (batch, out_features)
    assert jnp.allclose(out, ref, atol=1e-4, rtol=1e-4), "f32 small-batch mismatch"

    # --- batch-tiled path with a ragged tail (exercises grid + masked tail store) ---
    batch2 = 515
    x2 = jax.random.normal(kx2, (batch2, in_features), jnp.float32)
    out2 = jax.block_until_ready(toy_model_forward(x2, *padded_f32))
    ref2 = reference_forward(x2, w1, w2, gamma, beta)
    assert out2.shape == (batch2, out_features)
    assert jnp.allclose(out2, ref2, atol=1e-4, rtol=1e-4), "f32 tiled-batch mismatch"

    # --- bf16 I/O path (halves HBM traffic on v5e/v6e; LN math stays f32 in-kernel) ---
    padded_bf16 = pack_params(w1, w2, gamma, beta, jnp.bfloat16)
    out_bf16 = jax.block_until_ready(
        toy_model_forward(x2.astype(jnp.bfloat16), *padded_bf16))
    assert out_bf16.dtype == jnp.bfloat16
    # loose sanity bound for the reduced-precision path (structure bugs would be O(1) off)
    assert jnp.allclose(out_bf16.astype(jnp.float32), ref2, atol=1e-1, rtol=1e-1), \
        "bf16 path mismatch"

    print("KERNEL_OK")
</pallas_src>

<mosaic_0001>
module attributes {stable_mosaic.version = 11 : i64} {
  func.func @toy_model_kernel(%arg0: i32, %arg1: memref<8x32xf32, #tpu.memory_space<vmem>>, %arg2: memref<32x128xf32, #tpu.memory_space<vmem>>, %arg3: memref<128x16xf32, #tpu.memory_space<vmem>>, %arg4: memref<1x16xf32, #tpu.memory_space<vmem>>, %arg5: memref<8x16xf32, #tpu.memory_space<vmem>>) attributes {dimension_semantics = [#tpu.dimension_semantics<parallel>], iteration_bounds = array<i64: 1>, scalar_prefetch = 0 : i64, scratch_operands = 0 : i64, tpu.core_type = #tpu.core_type<tc>, window_params = [{transform_indices = @transform_0, window_bounds = array<i64: 8, 32>}, {pipeline_mode = #tpu.pipeline_mode<synchronous>, transform_indices = @transform_1, window_bounds = array<i64: 32, 128>}, {pipeline_mode = #tpu.pipeline_mode<synchronous>, transform_indices = @transform_2, window_bounds = array<i64: 128, 16>}, {pipeline_mode = #tpu.pipeline_mode<synchronous>, transform_indices = @transform_3, window_bounds = array<i64: 1, 16>}, {transform_indices = @transform_4, window_bounds = array<i64: 8, 16>}]} {
    %c0 = arith.constant 0 : index
    %c0_0 = arith.constant 0 : index
    %0 = vector.load %arg1[%c0, %c0_0] : memref<8x32xf32, #tpu.memory_space<vmem>>, vector<8x32xf32>
    %c0_1 = arith.constant 0 : index
    %c0_2 = arith.constant 0 : index
    %1 = vector.load %arg2[%c0_1, %c0_2] : memref<32x128xf32, #tpu.memory_space<vmem>>, vector<32x128xf32>
    %cst = arith.constant dense<0.000000e+00> : vector<8x128xf32>
    %2 = tpu.matmul %0, %1, %cst {dimension_numbers = #tpu.dot_dimension_numbers<[1], [0], [0], [1], [0, 0, 1, 1], [], []>} : vector<8x32xf32>, vector<32x128xf32>, vector<8x128xf32> -> vector<8x128xf32>
    %cst_3 = arith.constant 0.000000e+00 : f32
    %3 = vector.broadcast %cst_3 : f32 to vector<8x128xf32>
    %4 = arith.maximumf %2, %3 : vector<8x128xf32>
    %cst_4 = arith.constant dense<0.000000e+00> : vector<8xf32>
    %5 = vector.multi_reduction <add>, %4, %cst_4 [1] : vector<8x128xf32> to vector<8xf32>
    %6 = vector.shape_cast %5 : vector<8xf32> to vector<8x1xf32>
    %7 = arith.mulf %4, %4 : vector<8x128xf32>
    %cst_5 = arith.constant dense<0.000000e+00> : vector<8xf32>
    %8 = vector.multi_reduction <add>, %7, %cst_5 [1] : vector<8x128xf32> to vector<8xf32>
    %9 = vector.shape_cast %8 : vector<8xf32> to vector<8x1xf32>
    %cst_6 = arith.constant 1.000000e-01 : f32
    %10 = vector.broadcast %cst_6 : f32 to vector<8x1xf32>
    %11 = arith.mulf %6, %10 : vector<8x1xf32>
    %cst_7 = arith.constant 1.000000e-01 : f32
    %12 = vector.broadcast %cst_7 : f32 to vector<8x1xf32>
    %13 = arith.mulf %9, %12 : vector<8x1xf32>
    %14 = arith.mulf %11, %11 : vector<8x1xf32>
    %15 = arith.subf %13, %14 : vector<8x1xf32>
    %cst_8 = arith.constant 9.99999974E-6 : f32
    %16 = vector.broadcast %cst_8 : f32 to vector<8x1xf32>
    %17 = arith.addf %15, %16 : vector<8x1xf32>
    %18 = math.rsqrt %17 : vector<8x1xf32>
    %19 = vector.broadcast %11 : vector<8x1xf32> to vector<8x128xf32>
    %20 = arith.subf %4, %19 : vector<8x128xf32>
    %21 = vector.broadcast %18 : vector<8x1xf32> to vector<8x128xf32>
    %22 = arith.mulf %20, %21 : vector<8x128xf32>
    %c0_9 = arith.constant 0 : index
    %c0_10 = arith.constant 0 : index
    %23 = vector.load %arg3[%c0_9, %c0_10] : memref<128x16xf32, #tpu.memory_space<vmem>>, vector<128x16xf32>
    %cst_11 = arith.constant dense<0.000000e+00> : vector<8x16xf32>
    %24 = tpu.matmul %22, %23, %cst_11 {dimension_numbers = #tpu.dot_dimension_numbers<[1], [0], [0], [1], [0, 0, 1, 1], [], []>} : vector<8x128xf32>, vector<128x16xf32>, vector<8x16xf32> -> vector<8x16xf32>
    %c0_12 = arith.constant 0 : index
    %c0_13 = arith.constant 0 : index
    %25 = vector.load %arg4[%c0_12, %c0_13] : memref<1x16xf32, #tpu.memory_space<vmem>>, vector<1x16xf32>
    %26 = vector.broadcast %25 : vector<1x16xf32> to vector<8x16xf32>
    %27 = arith.addf %24, %26 : vector<8x16xf32>
    %c0_14 = arith.constant 0 : index
    %c0_15 = arith.constant 0 : index
    %28 = vector.load %arg5[%c0_14, %c0_15] : memref<8x16xf32, #tpu.memory_space<vmem>>, vector<8x16xf32>
    tpu.vector_store %arg5[%c0_14, %c0_15], %27 {strides = array<i32>} : memref<8x16xf32, #tpu.memory_space<vmem>>, vector<8x16xf32>,
    return
  }
  func.func @transform_0(%arg0: i32) -> (i32, i32) {
    %c0_i32 = arith.constant 0 : i32
    %c0_i32_0 = arith.constant 0 : i32
    return %arg0, %c0_i32 : i32, i32
  }
  func.func @transform_1(%arg0: i32) -> (i32, i32) {
    %c0_i32 = arith.constant 0 : i32
    %c0_i32_0 = arith.constant 0 : i32
    %c0_i32_1 = arith.constant 0 : i32
    return %c0_i32, %c0_i32_0 : i32, i32
  }
  func.func @transform_2(%arg0: i32) -> (i32, i32) {
    %c0_i32 = arith.constant 0 : i32
    %c0_i32_0 = arith.constant 0 : i32
    %c0_i32_1 = arith.constant 0 : i32
    return %c0_i32, %c0_i32_0 : i32, i32
  }
  func.func @transform_3(%arg0: i32) -> (i32, i32) {
    %c0_i32 = arith.constant 0 : i32
    %c0_i32_0 = arith.constant 0 : i32
    %c0_i32_1 = arith.constant 0 : i32
    return %c0_i32, %c0_i32_0 : i32, i32
  }
  func.func @transform_4(%arg0: i32) -> (i32, i32) {
    %c0_i32 = arith.constant 0 : i32
    %c0_i32_0 = arith.constant 0 : i32
    return %arg0, %c0_i32 : i32, i32
  }
}

</mosaic_0001>

<bundles_post_ra>
// kernel: tpu_custom_call.1
= control target key start
LH: loop header
LB: loop body
LE: loop exit
PB: predicated region body
PF: predicated region fallthrough
CT: control target
= control target key end

     0   :  { %s254_s0 = inlined_call_operand.vmem [shape: f32[8,32], index: 0, kind: input, shape index: {}]   ;;  %s255_s1 = inlined_call_operand.vmem [shape: f32[32,128], index: 1, kind: input, shape index: {}]   ;;  %s256_s2 = inlined_call_operand.vmem [shape: f32[128,16], index: 2, kind: input, shape index: {}]   ;;  %s257_s3 = inlined_call_operand.vmem [shape: f32[1,16], index: 3, kind: input, shape index: {}]   ;;  %s258_s4 = inlined_call_operand.hbm [shape: f32[8,16], index: 4, kind: output, shape index: {}]  }
   0x1   :  { %v22_v0 = vld [vmem:[%s255_s1 + $0x18] sm:$0xff]  ;;  %v21_v1 = vld [vmem:[%s255_s1 + $0x10] sm:$0xff]  ;;  %v20_v2 = vld [vmem:[%s255_s1 + $0x8] sm:$0xff] }
   0x2   :  { %39 = vmatpush.msra.mxu0 %v22_v0 }
   0x3   :  { %9 = vsyncpa [#allocation3], 0  ;;  %v19_v3 = vld [vmem:[%s255_s1] sm:$0xff]  ;;  %vm23_vm0 = vcmask 261120   ;;  %v85_v8 = vld [vmem:[%s256_s2 + $0x78] sm:$0xff]  ;;  %s159_s29 = smov [#allocation2]  }
   0x4   :  { %40 = vmatpush.msra.mxu0 %v21_v1  ;;  %v18_v4 = vld [vmem:[%s254_s0] sm:$0xff]  ;;  %v84_v9 = vld [vmem:[%s256_s2 + $0x70] sm:$0xff]  ;;  %90 = vmatpush.msra.mxu1 %v85_v8  ;;  %v83_v10 = vld [vmem:[%s256_s2 + $0x68] sm:$0xff]  ;;  %s117_s0 = sshll.u32 %s159_s29, 4  ;;  %s119_s6 = sshll.u32 %s258_s4, 4  ;;  %vm110_vm4 = vcmask 130048   ;;  %s118_s0 = int_to_ptr.vmem [resolvable:$true] %s117_s0  ;;  %s120_s6 = int_to_ptr.hbm [resolvable:$true] %s119_s6 }
   0x5   :  { %v82_v11 = vld [vmem:[%s256_s2 + $0x60] sm:$0xff]  ;;  %v81_v12 = vld [vmem:[%s256_s2 + $0x58] sm:$0xff]  ;;  %v80_v13 = vld [vmem:[%s256_s2 + $0x50] sm:$0xff] }
   0x6   :  { %41 = vmatpush.msra.mxu0 %v20_v2  ;;  %91 = vmatpush.msra.mxu1 %v84_v9  ;;  %v79_v14 = vld [vmem:[%s256_s2 + $0x48] sm:$0xff]  ;;  %v78_v15 = vld [vmem:[%s256_s2 + $0x40] sm:$0xff]  ;;  %v77_v16 = vld [vmem:[%s256_s2 + $0x38] sm:$0xff] }
   0x7   :  { %v76_v17 = vld [vmem:[%s256_s2 + $0x30] sm:$0xff]  ;;  %v75_v18 = vld [vmem:[%s256_s2 + $0x28] sm:$0xff]  ;;  %v74_v19 = vld [vmem:[%s256_s2 + $0x20] sm:$0xff] }
   0x8   :  { %42 = vmatpush.msra.mxu0 %v19_v3  ;;  %92 = vmatpush.msra.mxu1 %v83_v10  ;;  %v73_v20 = vld [vmem:[%s256_s2 + $0x18] sm:$0xff]  ;;  %v72_v21 = vld [vmem:[%s256_s2 + $0x10] sm:$0xff]  ;;  %v71_v22 = vld [vmem:[%s256_s2 + $0x8] sm:$0xff] }
   0x9   :  { %128 = vmatmul.msk.f32.vlgmr.msra.gmra.mxu0 %vm23_vm0, %v18_v4  ;;  %v70_v23 = vld [vmem:[%s256_s2] sm:$0xff] }
   0xa   :  { %93 = vmatpush.msra.mxu1 %v82_v11  ;;  %v130_v40 = vld [vmem:[%s257_s3] ss:$0 sm:$0xff] }
   0xc   :  { %94 = vmatpush.msra.mxu1 %v81_v12 }
   0xe   :  { %95 = vmatpush.msra.mxu1 %v80_v13 }
  0x10   :  { %96 = vmatpush.msra.mxu1 %v79_v14 }
  0x12   :  { %97 = vmatpush.msra.mxu1 %v78_v15 }
  0x14   :  { %98 = vmatpush.msra.mxu1 %v77_v16 }
  0x16   :  { %99 = vmatpush.msra.mxu1 %v76_v17 }
  0x18   :  { %100 = vmatpush.msra.mxu1 %v75_v18 }
  0x1a   :  { %101 = vmatpush.msra.mxu1 %v74_v19 }
  0x1c   :  { %102 = vmatpush.msra.mxu1 %v73_v20 }
  0x1e   :  { %103 = vmatpush.msra.mxu1 %v72_v21 }
  0x20   :  { %104 = vmatpush.msra.mxu1 %v71_v22 }
  0x22   :  { %105 = vmatpush.msra.mxu1 %v70_v23 }
  0x86   :  { %v44_v5 = vpop.f32.mrf.mxu0 }
  0x87   :  { %v47_v6 = vmax.f32 %v44_v5, 0.0 }
  0x89   :  { %48 = vadd.xlane.f32.xlu0 %v47_v6  ;;  %v50_v7 = vmul.f32 %v47_v6, %v47_v6 }
  0x91   :  { %51 = vadd.xlane.f32.xlu0 %v50_v7 }
  0xfc   :  { %v49_v24 = vpop.xlane.xlu0 %48 }
  0xfd   :  { %v53_v25 = vmul.f32 0.1, %v49_v24 }
  0xff   :  { %v55_v27 = vmul.f32 %v53_v25, %v53_v25  ;;  %v68_v37 = vsub.f32 %v47_v6, %v53_v25 }
 0x104   :  { %v52_v26 = vpop.xlane.xlu0 %51 }
 0x105   :  { %v54_v28 = vmul.f32 0.1, %v52_v26 }
 0x107   :  { %v56_v29 = vsub.f32 %v54_v28, %v55_v27 }
 0x109   :  { %v57_v30 = vadd.f32 1e-05, %v56_v29 }
 0x10b   :  { %131 = vrsqrt.f32 %v57_v30  ;;  %vm64_vm2 = vweird.f32 %v57_v30 }
 0x111   :  { %v132_v31 = vpop.eup %131 }
 0x112   :  { %v59_v32 = vmul.f32 %v132_v31, %v57_v30  ;;  %vm65_vm1 = vweird.f32 %v132_v31 }
 0x113   :  { %vm66_vm3 = vmor %vm64_vm2, %vm65_vm1 }
 0x114   :  { %v60_v33 = vmul.f32 %v132_v31, %v59_v32 }
 0x116   :  { %v61_v34 = vmul.f32 0.5, %v60_v33 }
 0x118   :  { %v62_v35 = vsub.f32 1.5, %v61_v34 }
 0x11a   :  { %v63_v36 = vmul.f32 %v132_v31, %v62_v35 }
 0x11c   :  { %v67_v38 = vsel %vm66_vm3, %v132_v31, %v63_v36 }
 0x11d   :  { %v69_v39 = vmul.f32 %v68_v37, %v67_v38 }
 0x11f   :  { %106 = vmatmul.f32.vlgmr.msra.gmra.mxu1 %v69_v39 }
 0x19c   :  { %v107_v41 = vpop.f32.mrf.mxu1 }
 0x19d   :  { %v108_v42 = vadd.f32 %v130_v40, %v107_v41 }
 0x19f   :  { %111 = vst.msk [vmem:[#allocation2] sm:$0xff] %vm110_vm4, %v108_v42 }
 0x1a0   :  { %122 = dma.vmem_to_hbm [thread:$0]  %s118_s0, 128, %s120_s6, [#allocation3]  }
 0x1a1   :  { %157 = dma.done.wait [#allocation3], 128  }
 0x1a2   :  { %158 = vsyncadd [#allocation3], 4294967168 }
 0x1a3   :  { %127 = vsyncpa [#allocation3], 1 }

</bundles_post_ra>
